<compile_context>
chip_gen: v7x
topology: tpu7x:2x2x1
jax: 0.10.0
libtpu: 0.0.40
codegen_flags: <defaults>
</compile_context>

<pallas_src>
import functools
import math

import jax
import jax.numpy as jnp
from jax.experimental import pallas as pl
from jax.experimental.pallas import tpu as pltpu


# ----------------------------- fused kernel --------------------------------

def _tree_chain_kernel(x_ref, lens_ref,
                       wh_ref, bh_ref, wc_ref, bc_ref,
                       wl_ref, wr_ref, b5_ref,
                       out_ref,
                       h_st, c_st,
                       *, tb, npair):
    """One grid step = one level of the binary-tree chain composition.

    x_ref    : (1, L*tb, D)  position-major leaf embeddings for this batch tile
    lens_ref : (1, npair, 1) int32, per-row sequence lengths (npair=(L-1)*tb)
    wh/wc    : (D, H)        word_linear split into h / c halves
    bh/bc    : (1, H)
    wl/wr    : (5, H, H)     comp_linear left / right halves, per-gate
    b5       : (5, 1, H)     comp bias (forget +1 folded into gates 1, 2)
    out_ref  : (tb, H)       root hidden state for this batch tile
    h_st/c_st: (L*tb, H) f32 VMEM scratch, persistent across grid steps
    """
    t = pl.program_id(1)

    # ---- step 0: leaf transform (word_linear), fills the state scratch ----
    @pl.when(t == 0)
    def _leaf():
        x2d = x_ref[0]                                              # (L*tb, D)
        h_st[...] = (jnp.dot(x2d, wh_ref[...],
                             preferred_element_type=jnp.float32) + bh_ref[...])
        c_st[...] = (jnp.dot(x2d, wc_ref[...],
                             preferred_element_type=jnp.float32) + bc_ref[...])

    # ---- compose adjacent pairs (position-major rows are contiguous) ------
    hl = h_st[0:npair, :]
    hr = h_st[tb:tb + npair, :]
    cl = c_st[0:npair, :]
    cr = c_st[tb:tb + npair, :]

    def gate(k):
        return (jnp.dot(hl, wl_ref[k], preferred_element_type=jnp.float32)
                + jnp.dot(hr, wr_ref[k], preferred_element_type=jnp.float32)
                + b5_ref[k])

    i_g = gate(0)
    fl_g = gate(1)   # +1 forget bias already folded into b5[1]
    fr_g = gate(2)   # +1 forget bias already folded into b5[2]
    u_g = gate(3)
    o_g = gate(4)

    c_new = (cl * jax.nn.sigmoid(fl_g)
             + cr * jax.nn.sigmoid(fr_g)
             + jnp.tanh(u_g) * jax.nn.sigmoid(i_g))
    h_new = jax.nn.sigmoid(o_g) * jnp.tanh(c_new)

    # ---- done-mask select (update_state): finished sequences keep old state
    active = (lens_ref[0] - 1) > t                                   # (npair, 1)
    h_st[0:npair, :] = jnp.where(active, h_new, hl)
    c_st[0:npair, :] = jnp.where(active, c_new, cl)

    # ---- final step: emit root hidden state --------------------------------
    @pl.when(t == pl.num_programs(1) - 1)
    def _emit():
        out_ref[...] = h_st[0:tb, :].astype(out_ref.dtype)


# ----------------------------- wrapper --------------------------------------

def _pick_batch_tile(batch):
    # Prefer 8-row batch tiles for large batches (clean sublane tiling and
    # megacore sharding); small batches stay a single tile.
    if batch >= 16 and batch % 8 == 0:
        return 8
    return batch


def tree_lstm_forward(x, lengths, params, *, batch_tile=None):
    """x: (B, L, word_dim) -> root hidden state (B, hidden_dim)."""
    B, L, D = x.shape
    wh, bh, wc, bc, wl, wr, b5 = params
    H = wh.shape[1]

    if lengths is None:
        lengths = jnp.full((B,), L, dtype=jnp.int32)
    lengths = lengths.astype(jnp.int32)

    if L == 1:
        # No composition needed: root is the leaf h at position 0.
        return (jnp.dot(x[:, 0, :], wh) + bh).astype(x.dtype)

    tb = batch_tile if batch_tile is not None else _pick_batch_tile(B)
    assert B % tb == 0, "batch must be divisible by the batch tile"
    nbt = B // tb
    npair = (L - 1) * tb

    # Position-major layout inside each batch tile: row = p * tb + b.
    x_pm = (x.reshape(nbt, tb, L, D)
             .transpose(0, 2, 1, 3)
             .reshape(nbt, L * tb, D))
    lens_rows = jnp.broadcast_to(lengths.reshape(nbt, 1, tb),
                                 (nbt, L - 1, tb)).reshape(nbt, npair, 1)

    kernel = functools.partial(_tree_chain_kernel, tb=tb, npair=npair)
    const2 = lambda bi, t: (0, 0)
    const3 = lambda bi, t: (0, 0, 0)

    out = pl.pallas_call(
        kernel,
        out_shape=jax.ShapeDtypeStruct((B, H), x.dtype),
        grid_spec=pltpu.PrefetchScalarGridSpec(
            num_scalar_prefetch=0,
            grid=(nbt, L - 1),
            in_specs=[
                pl.BlockSpec((1, L * tb, D), lambda bi, t: (bi, 0, 0)),   # x
                pl.BlockSpec((1, npair, 1), lambda bi, t: (bi, 0, 0)),    # lens
                pl.BlockSpec((D, H), const2),                             # wh
                pl.BlockSpec((1, H), const2),                             # bh
                pl.BlockSpec((D, H), const2),                             # wc
                pl.BlockSpec((1, H), const2),                             # bc
                pl.BlockSpec((5, H, H), const3),                          # wl
                pl.BlockSpec((5, H, H), const3),                          # wr
                pl.BlockSpec((5, 1, H), const3),                          # b5
            ],
            out_specs=pl.BlockSpec((tb, H), lambda bi, t: (bi, 0)),
            scratch_shapes=[pltpu.VMEM((L * tb, H), jnp.float32),
                            pltpu.VMEM((L * tb, H), jnp.float32)],
        ),
        compiler_params=pltpu.CompilerParams(
            dimension_semantics=("parallel", "arbitrary")),
    )(x_pm, lens_rows, wh, bh, wc, bc, wl, wr, b5)
    return out


# ----------------------------- encoder --------------------------------------

class TreeLSTMEncoderPallas:
    """TreeLSTMEncoder with use_leaf_rnn=False, bidirectional=False,
    pooling_method='final'."""

    def __init__(self, word_dim, hidden_dim, pooling_method="final",
                 key=jax.random.PRNGKey(0), dtype=jnp.float32):
        self.word_dim = word_dim
        self.hidden_dim = hidden_dim
        self.pooling_method = pooling_method
        k1, k2, k3, k4 = jax.random.split(key, 4)

        # word_linear: Linear(word_dim, 2*hidden_dim), kaiming_normal weights,
        # zero bias.  Stored transposed and split into the h / c halves.
        std_w = math.sqrt(2.0 / word_dim)
        self.wh = jax.random.normal(k1, (word_dim, hidden_dim), dtype) * std_w
        self.wc = jax.random.normal(k2, (word_dim, hidden_dim), dtype) * std_w
        self.bh = jnp.zeros((1, hidden_dim), dtype)
        self.bc = jnp.zeros((1, hidden_dim), dtype)

        # comp_linear: Linear(2*hidden_dim, 5*hidden_dim), kaiming_normal,
        # zero bias.  Stored as per-gate stacks for the left / right child
        # halves of the input: gates ordered (i, fl, fr, u, o).
        std_c = math.sqrt(2.0 / (2 * hidden_dim))
        self.wl = jax.random.normal(k3, (5, hidden_dim, hidden_dim), dtype) * std_c
        self.wr = jax.random.normal(k4, (5, hidden_dim, hidden_dim), dtype) * std_c
        # Forget-gate "+1" of the reference is folded into the bias here.
        b5 = jnp.zeros((5, 1, hidden_dim), dtype)
        self.b5 = b5.at[1].set(1.0).at[2].set(1.0)

    def params(self):
        return (self.wh, self.bh, self.wc, self.bc, self.wl, self.wr, self.b5)

    def __call__(self, x, lengths=None):
        # TODO(synk): pooling_method other than 'final' not implemented.
        return tree_lstm_forward(x, lengths, self.params())


# ----------------------------- reference (pure JAX) --------------------------

def _reference_forward(x, lengths, params):
    wh, bh, wc, bc, wl, wr, b5 = params
    h = jnp.einsum("bld,dh->blh", x, wh) + bh
    c = jnp.einsum("bld,dh->blh", x, wc) + bc
    L = x.shape[1]
    for t in range(L - 1):
        hl, hr = h[:, :-1, :], h[:, 1:, :]
        cl, cr = c[:, :-1, :], c[:, 1:, :]
        g = [jnp.einsum("blh,hj->blj", hl, wl[k])
             + jnp.einsum("blh,hj->blj", hr, wr[k]) + b5[k] for k in range(5)]
        i_g, fl_g, fr_g, u_g, o_g = g
        c_new = (cl * jax.nn.sigmoid(fl_g) + cr * jax.nn.sigmoid(fr_g)
                 + jnp.tanh(u_g) * jax.nn.sigmoid(i_g))
        h_new = jax.nn.sigmoid(o_g) * jnp.tanh(c_new)
        m = (lengths - 1 > t).astype(h.dtype)[:, None, None]
        h = m * h_new + (1.0 - m) * hl
        c = m * c_new + (1.0 - m) * cl
    return h[:, 0, :]


# ----------------------------- main ------------------------------------------

if __name__ == "__main__":
    B, L, WORD_DIM, HIDDEN = 2, 8, 16, 32

    key = jax.random.PRNGKey(0)
    k_x, k_p = jax.random.split(key)
    x = jax.random.normal(k_x, (B, L, WORD_DIM), jnp.float32)
    lengths = jnp.array([L, 5], dtype=jnp.int32)   # exercise the done mask

    enc = TreeLSTMEncoderPallas(word_dim=WORD_DIM, hidden_dim=HIDDEN,
                                pooling_method="final", key=k_p)

    out = enc(x, lengths)
    out = jax.block_until_ready(out)

    ref = jax.block_until_ready(_reference_forward(x, lengths, enc.params()))

    assert out.shape == (B, HIDDEN)
    assert jnp.all(jnp.isfinite(out))
    assert jnp.allclose(out, ref, atol=1e-3, rtol=1e-3), (
        f"max abs err {jnp.max(jnp.abs(out - ref))}")
    print("KERNEL_OK")
</pallas_src>

<mosaic_0001>
module attributes {stable_mosaic.version = 11 : i64} {
  func.func @_tree_chain_kernel(%arg0: i32, %arg1: i32, %arg2: memref<1x16x16xf32, #tpu.memory_space<vmem>>, %arg3: memref<1x14x1xi32, #tpu.memory_space<vmem>>, %arg4: memref<16x32xf32, #tpu.memory_space<vmem>>, %arg5: memref<1x32xf32, #tpu.memory_space<vmem>>, %arg6: memref<16x32xf32, #tpu.memory_space<vmem>>, %arg7: memref<1x32xf32, #tpu.memory_space<vmem>>, %arg8: memref<5x32x32xf32, #tpu.memory_space<vmem>>, %arg9: memref<5x32x32xf32, #tpu.memory_space<vmem>>, %arg10: memref<5x1x32xf32, #tpu.memory_space<vmem>>, %arg11: memref<2x32xf32, #tpu.memory_space<vmem>>, %arg12: memref<16x32xf32, #tpu.memory_space<vmem>>, %arg13: memref<16x32xf32, #tpu.memory_space<vmem>>) attributes {dimension_semantics = [#tpu.dimension_semantics<parallel>, #tpu.dimension_semantics<arbitrary>], iteration_bounds = array<i64: 1, 7>, scalar_prefetch = 0 : i64, scratch_operands = 2 : i64, tpu.core_type = #tpu.core_type<tc>, window_params = [{transform_indices = @transform_0, window_bounds = array<i64: 1, 16, 16>}, {transform_indices = @transform_1, window_bounds = array<i64: 1, 14, 1>}, {pipeline_mode = #tpu.pipeline_mode<synchronous>, transform_indices = @transform_2, window_bounds = array<i64: 16, 32>}, {pipeline_mode = #tpu.pipeline_mode<synchronous>, transform_indices = @transform_3, window_bounds = array<i64: 1, 32>}, {pipeline_mode = #tpu.pipeline_mode<synchronous>, transform_indices = @transform_4, window_bounds = array<i64: 16, 32>}, {pipeline_mode = #tpu.pipeline_mode<synchronous>, transform_indices = @transform_5, window_bounds = array<i64: 1, 32>}, {pipeline_mode = #tpu.pipeline_mode<synchronous>, transform_indices = @transform_6, window_bounds = array<i64: 5, 32, 32>}, {pipeline_mode = #tpu.pipeline_mode<synchronous>, transform_indices = @transform_7, window_bounds = array<i64: 5, 32, 32>}, {pipeline_mode = #tpu.pipeline_mode<synchronous>, transform_indices = @transform_8, window_bounds = array<i64: 5, 1, 32>}, {transform_indices = @transform_9, window_bounds = array<i64: 2, 32>}]} {
    %c0_i32 = arith.constant 0 : i32
    %0 = arith.cmpi eq, %arg1, %c0_i32 : i32
    %1 = arith.extui %0 : i1 to i32
    %c0_i32_0 = arith.constant 0 : i32
    %2 = arith.cmpi ne, %1, %c0_i32_0 : i32
    scf.if %2 {
      %c0_70 = arith.constant 0 : index
      %c0_71 = arith.constant 0 : index
      %c0_72 = arith.constant 0 : index
      %107 = vector.load %arg2[%c0_70, %c0_71, %c0_72] : memref<1x16x16xf32, #tpu.memory_space<vmem>>, vector<1x16x16xf32>
      %108 = vector.shape_cast %107 : vector<1x16x16xf32> to vector<16x16xf32>
      %c0_73 = arith.constant 0 : index
      %c0_74 = arith.constant 0 : index
      %109 = vector.load %arg4[%c0_73, %c0_74] : memref<16x32xf32, #tpu.memory_space<vmem>>, vector<16x32xf32>
      %cst_75 = arith.constant dense<0.000000e+00> : vector<16x32xf32>
      %110 = tpu.matmul %108, %109, %cst_75 {dimension_numbers = #tpu.dot_dimension_numbers<[1], [0], [0], [1], [0, 0, 1, 1], [], []>} : vector<16x16xf32>, vector<16x32xf32>, vector<16x32xf32> -> vector<16x32xf32>
      %c0_76 = arith.constant 0 : index
      %c0_77 = arith.constant 0 : index
      %111 = vector.load %arg5[%c0_76, %c0_77] : memref<1x32xf32, #tpu.memory_space<vmem>>, vector<1x32xf32>
      %112 = vector.broadcast %111 : vector<1x32xf32> to vector<16x32xf32>
      %113 = arith.addf %110, %112 : vector<16x32xf32>
      %c0_78 = arith.constant 0 : index
      %c0_79 = arith.constant 0 : index
      %114 = vector.load %arg12[%c0_78, %c0_79] : memref<16x32xf32, #tpu.memory_space<vmem>>, vector<16x32xf32>
      tpu.vector_store %arg12[%c0_78, %c0_79], %113 {strides = array<i32>} : memref<16x32xf32, #tpu.memory_space<vmem>>, vector<16x32xf32>,
      %c0_80 = arith.constant 0 : index
      %c0_81 = arith.constant 0 : index
      %115 = vector.load %arg6[%c0_80, %c0_81] : memref<16x32xf32, #tpu.memory_space<vmem>>, vector<16x32xf32>
      %cst_82 = arith.constant dense<0.000000e+00> : vector<16x32xf32>
      %116 = tpu.matmul %108, %115, %cst_82 {dimension_numbers = #tpu.dot_dimension_numbers<[1], [0], [0], [1], [0, 0, 1, 1], [], []>} : vector<16x16xf32>, vector<16x32xf32>, vector<16x32xf32> -> vector<16x32xf32>
      %c0_83 = arith.constant 0 : index
      %c0_84 = arith.constant 0 : index
      %117 = vector.load %arg7[%c0_83, %c0_84] : memref<1x32xf32, #tpu.memory_space<vmem>>, vector<1x32xf32>
      %118 = vector.broadcast %117 : vector<1x32xf32> to vector<16x32xf32>
      %119 = arith.addf %116, %118 : vector<16x32xf32>
      %c0_85 = arith.constant 0 : index
      %c0_86 = arith.constant 0 : index
      %120 = vector.load %arg13[%c0_85, %c0_86] : memref<16x32xf32, #tpu.memory_space<vmem>>, vector<16x32xf32>
      tpu.vector_store %arg13[%c0_85, %c0_86], %119 {strides = array<i32>} : memref<16x32xf32, #tpu.memory_space<vmem>>, vector<16x32xf32>,
    } else {
    }
    %c0 = arith.constant 0 : index
    %c0_1 = arith.constant 0 : index
    %3 = vector.load %arg12[%c0, %c0_1] : memref<16x32xf32, #tpu.memory_space<vmem>>, vector<14x32xf32>
    %c2 = arith.constant 2 : index
    %c0_2 = arith.constant 0 : index
    %4 = vector.load %arg12[%c2, %c0_2] : memref<16x32xf32, #tpu.memory_space<vmem>>, vector<14x32xf32>
    %c0_3 = arith.constant 0 : index
    %c0_4 = arith.constant 0 : index
    %5 = vector.load %arg13[%c0_3, %c0_4] : memref<16x32xf32, #tpu.memory_space<vmem>>, vector<14x32xf32>
    %c2_5 = arith.constant 2 : index
    %c0_6 = arith.constant 0 : index
    %6 = vector.load %arg13[%c2_5, %c0_6] : memref<16x32xf32, #tpu.memory_space<vmem>>, vector<14x32xf32>
    %c0_7 = arith.constant 0 : index
    %c0_8 = arith.constant 0 : index
    %c0_9 = arith.constant 0 : index
    %7 = vector.load %arg8[%c0_7, %c0_8, %c0_9] : memref<5x32x32xf32, #tpu.memory_space<vmem>>, vector<1x32x32xf32>
    %8 = vector.shape_cast %7 : vector<1x32x32xf32> to vector<32x32xf32>
    %cst = arith.constant dense<0.000000e+00> : vector<14x32xf32>
    %9 = tpu.matmul %3, %8, %cst {dimension_numbers = #tpu.dot_dimension_numbers<[1], [0], [0], [1], [0, 0, 1, 1], [], []>} : vector<14x32xf32>, vector<32x32xf32>, vector<14x32xf32> -> vector<14x32xf32>
    %c0_10 = arith.constant 0 : index
    %c0_11 = arith.constant 0 : index
    %c0_12 = arith.constant 0 : index
    %10 = vector.load %arg9[%c0_10, %c0_11, %c0_12] : memref<5x32x32xf32, #tpu.memory_space<vmem>>, vector<1x32x32xf32>
    %11 = vector.shape_cast %10 : vector<1x32x32xf32> to vector<32x32xf32>
    %cst_13 = arith.constant dense<0.000000e+00> : vector<14x32xf32>
    %12 = tpu.matmul %4, %11, %cst_13 {dimension_numbers = #tpu.dot_dimension_numbers<[1], [0], [0], [1], [0, 0, 1, 1], [], []>} : vector<14x32xf32>, vector<32x32xf32>, vector<14x32xf32> -> vector<14x32xf32>
    %13 = arith.addf %9, %12 : vector<14x32xf32>
    %c0_14 = arith.constant 0 : index
    %c0_15 = arith.constant 0 : index
    %c0_16 = arith.constant 0 : index
    %14 = vector.load %arg10[%c0_14, %c0_15, %c0_16] : memref<5x1x32xf32, #tpu.memory_space<vmem>>, vector<1x1x32xf32>
    %15 = vector.shape_cast %14 : vector<1x1x32xf32> to vector<1x32xf32>
    %16 = vector.broadcast %15 : vector<1x32xf32> to vector<14x32xf32>
    %17 = arith.addf %13, %16 : vector<14x32xf32>
    %c1 = arith.constant 1 : index
    %c0_17 = arith.constant 0 : index
    %c0_18 = arith.constant 0 : index
    %18 = vector.load %arg8[%c1, %c0_17, %c0_18] : memref<5x32x32xf32, #tpu.memory_space<vmem>>, vector<1x32x32xf32>
    %19 = vector.shape_cast %18 : vector<1x32x32xf32> to vector<32x32xf32>
    %cst_19 = arith.constant dense<0.000000e+00> : vector<14x32xf32>
    %20 = tpu.matmul %3, %19, %cst_19 {dimension_numbers = #tpu.dot_dimension_numbers<[1], [0], [0], [1], [0, 0, 1, 1], [], []>} : vector<14x32xf32>, vector<32x32xf32>, vector<14x32xf32> -> vector<14x32xf32>
    %c1_20 = arith.constant 1 : index
    %c0_21 = arith.constant 0 : index
    %c0_22 = arith.constant 0 : index
    %21 = vector.load %arg9[%c1_20, %c0_21, %c0_22] : memref<5x32x32xf32, #tpu.memory_space<vmem>>, vector<1x32x32xf32>
    %22 = vector.shape_cast %21 : vector<1x32x32xf32> to vector<32x32xf32>
    %cst_23 = arith.constant dense<0.000000e+00> : vector<14x32xf32>
    %23 = tpu.matmul %4, %22, %cst_23 {dimension_numbers = #tpu.dot_dimension_numbers<[1], [0], [0], [1], [0, 0, 1, 1], [], []>} : vector<14x32xf32>, vector<32x32xf32>, vector<14x32xf32> -> vector<14x32xf32>
    %24 = arith.addf %20, %23 : vector<14x32xf32>
    %c1_24 = arith.constant 1 : index
    %c0_25 = arith.constant 0 : index
    %c0_26 = arith.constant 0 : index
    %25 = vector.load %arg10[%c1_24, %c0_25, %c0_26] : memref<5x1x32xf32, #tpu.memory_space<vmem>>, vector<1x1x32xf32>
    %26 = vector.shape_cast %25 : vector<1x1x32xf32> to vector<1x32xf32>
    %27 = vector.broadcast %26 : vector<1x32xf32> to vector<14x32xf32>
    %28 = arith.addf %24, %27 : vector<14x32xf32>
    %c2_27 = arith.constant 2 : index
    %c0_28 = arith.constant 0 : index
    %c0_29 = arith.constant 0 : index
    %29 = vector.load %arg8[%c2_27, %c0_28, %c0_29] : memref<5x32x32xf32, #tpu.memory_space<vmem>>, vector<1x32x32xf32>
    %30 = vector.shape_cast %29 : vector<1x32x32xf32> to vector<32x32xf32>
    %cst_30 = arith.constant dense<0.000000e+00> : vector<14x32xf32>
    %31 = tpu.matmul %3, %30, %cst_30 {dimension_numbers = #tpu.dot_dimension_numbers<[1], [0], [0], [1], [0, 0, 1, 1], [], []>} : vector<14x32xf32>, vector<32x32xf32>, vector<14x32xf32> -> vector<14x32xf32>
    %c2_31 = arith.constant 2 : index
    %c0_32 = arith.constant 0 : index
    %c0_33 = arith.constant 0 : index
    %32 = vector.load %arg9[%c2_31, %c0_32, %c0_33] : memref<5x32x32xf32, #tpu.memory_space<vmem>>, vector<1x32x32xf32>
    %33 = vector.shape_cast %32 : vector<1x32x32xf32> to vector<32x32xf32>
    %cst_34 = arith.constant dense<0.000000e+00> : vector<14x32xf32>
    %34 = tpu.matmul %4, %33, %cst_34 {dimension_numbers = #tpu.dot_dimension_numbers<[1], [0], [0], [1], [0, 0, 1, 1], [], []>} : vector<14x32xf32>, vector<32x32xf32>, vector<14x32xf32> -> vector<14x32xf32>
    %35 = arith.addf %31, %34 : vector<14x32xf32>
    %c2_35 = arith.constant 2 : index
    %c0_36 = arith.constant 0 : index
    %c0_37 = arith.constant 0 : index
    %36 = vector.load %arg10[%c2_35, %c0_36, %c0_37] : memref<5x1x32xf32, #tpu.memory_space<vmem>>, vector<1x1x32xf32>
    %37 = vector.shape_cast %36 : vector<1x1x32xf32> to vector<1x32xf32>
    %38 = vector.broadcast %37 : vector<1x32xf32> to vector<14x32xf32>
    %39 = arith.addf %35, %38 : vector<14x32xf32>
    %c3 = arith.constant 3 : index
    %c0_38 = arith.constant 0 : index
    %c0_39 = arith.constant 0 : index
    %40 = vector.load %arg8[%c3, %c0_38, %c0_39] : memref<5x32x32xf32, #tpu.memory_space<vmem>>, vector<1x32x32xf32>
    %41 = vector.shape_cast %40 : vector<1x32x32xf32> to vector<32x32xf32>
    %cst_40 = arith.constant dense<0.000000e+00> : vector<14x32xf32>
    %42 = tpu.matmul %3, %41, %cst_40 {dimension_numbers = #tpu.dot_dimension_numbers<[1], [0], [0], [1], [0, 0, 1, 1], [], []>} : vector<14x32xf32>, vector<32x32xf32>, vector<14x32xf32> -> vector<14x32xf32>
    %c3_41 = arith.constant 3 : index
    %c0_42 = arith.constant 0 : index
    %c0_43 = arith.constant 0 : index
    %43 = vector.load %arg9[%c3_41, %c0_42, %c0_43] : memref<5x32x32xf32, #tpu.memory_space<vmem>>, vector<1x32x32xf32>
    %44 = vector.shape_cast %43 : vector<1x32x32xf32> to vector<32x32xf32>
    %cst_44 = arith.constant dense<0.000000e+00> : vector<14x32xf32>
    %45 = tpu.matmul %4, %44, %cst_44 {dimension_numbers = #tpu.dot_dimension_numbers<[1], [0], [0], [1], [0, 0, 1, 1], [], []>} : vector<14x32xf32>, vector<32x32xf32>, vector<14x32xf32> -> vector<14x32xf32>
    %46 = arith.addf %42, %45 : vector<14x32xf32>
    %c3_45 = arith.constant 3 : index
    %c0_46 = arith.constant 0 : index
    %c0_47 = arith.constant 0 : index
    %47 = vector.load %arg10[%c3_45, %c0_46, %c0_47] : memref<5x1x32xf32, #tpu.memory_space<vmem>>, vector<1x1x32xf32>
    %48 = vector.shape_cast %47 : vector<1x1x32xf32> to vector<1x32xf32>
    %49 = vector.broadcast %48 : vector<1x32xf32> to vector<14x32xf32>
    %50 = arith.addf %46, %49 : vector<14x32xf32>
    %c4 = arith.constant 4 : index
    %c0_48 = arith.constant 0 : index
    %c0_49 = arith.constant 0 : index
    %51 = vector.load %arg8[%c4, %c0_48, %c0_49] : memref<5x32x32xf32, #tpu.memory_space<vmem>>, vector<1x32x32xf32>
    %52 = vector.shape_cast %51 : vector<1x32x32xf32> to vector<32x32xf32>
    %cst_50 = arith.constant dense<0.000000e+00> : vector<14x32xf32>
    %53 = tpu.matmul %3, %52, %cst_50 {dimension_numbers = #tpu.dot_dimension_numbers<[1], [0], [0], [1], [0, 0, 1, 1], [], []>} : vector<14x32xf32>, vector<32x32xf32>, vector<14x32xf32> -> vector<14x32xf32>
    %c4_51 = arith.constant 4 : index
    %c0_52 = arith.constant 0 : index
    %c0_53 = arith.constant 0 : index
    %54 = vector.load %arg9[%c4_51, %c0_52, %c0_53] : memref<5x32x32xf32, #tpu.memory_space<vmem>>, vector<1x32x32xf32>
    %55 = vector.shape_cast %54 : vector<1x32x32xf32> to vector<32x32xf32>
    %cst_54 = arith.constant dense<0.000000e+00> : vector<14x32xf32>
    %56 = tpu.matmul %4, %55, %cst_54 {dimension_numbers = #tpu.dot_dimension_numbers<[1], [0], [0], [1], [0, 0, 1, 1], [], []>} : vector<14x32xf32>, vector<32x32xf32>, vector<14x32xf32> -> vector<14x32xf32>
    %57 = arith.addf %53, %56 : vector<14x32xf32>
    %c4_55 = arith.constant 4 : index
    %c0_56 = arith.constant 0 : index
    %c0_57 = arith.constant 0 : index
    %58 = vector.load %arg10[%c4_55, %c0_56, %c0_57] : memref<5x1x32xf32, #tpu.memory_space<vmem>>, vector<1x1x32xf32>
    %59 = vector.shape_cast %58 : vector<1x1x32xf32> to vector<1x32xf32>
    %60 = vector.broadcast %59 : vector<1x32xf32> to vector<14x32xf32>
    %61 = arith.addf %57, %60 : vector<14x32xf32>
    %62 = arith.negf %28 : vector<14x32xf32>
    %63 = math.exp %62 : vector<14x32xf32>
    %cst_58 = arith.constant 1.000000e+00 : f32
    %64 = vector.broadcast %cst_58 : f32 to vector<14x32xf32>
    %65 = arith.addf %64, %63 : vector<14x32xf32>
    %66 = arith.divf %64, %65 : vector<14x32xf32>
    %67 = arith.mulf %5, %66 : vector<14x32xf32>
    %68 = arith.negf %39 : vector<14x32xf32>
    %69 = math.exp %68 : vector<14x32xf32>
    %cst_59 = arith.constant 1.000000e+00 : f32
    %70 = vector.broadcast %cst_59 : f32 to vector<14x32xf32>
    %71 = arith.addf %70, %69 : vector<14x32xf32>
    %72 = arith.divf %70, %71 : vector<14x32xf32>
    %73 = arith.mulf %6, %72 : vector<14x32xf32>
    %74 = arith.addf %67, %73 : vector<14x32xf32>
    %75 = math.tanh %50 : vector<14x32xf32>
    %76 = arith.negf %17 : vector<14x32xf32>
    %77 = math.exp %76 : vector<14x32xf32>
    %cst_60 = arith.constant 1.000000e+00 : f32
    %78 = vector.broadcast %cst_60 : f32 to vector<14x32xf32>
    %79 = arith.addf %78, %77 : vector<14x32xf32>
    %80 = arith.divf %78, %79 : vector<14x32xf32>
    %81 = arith.mulf %75, %80 : vector<14x32xf32>
    %82 = arith.addf %74, %81 : vector<14x32xf32>
    %83 = arith.negf %61 : vector<14x32xf32>
    %84 = math.exp %83 : vector<14x32xf32>
    %cst_61 = arith.constant 1.000000e+00 : f32
    %85 = vector.broadcast %cst_61 : f32 to vector<14x32xf32>
    %86 = arith.addf %85, %84 : vector<14x32xf32>
    %87 = arith.divf %85, %86 : vector<14x32xf32>
    %88 = math.tanh %82 : vector<14x32xf32>
    %89 = arith.mulf %87, %88 : vector<14x32xf32>
    %c0_62 = arith.constant 0 : index
    %c0_63 = arith.constant 0 : index
    %c0_64 = arith.constant 0 : index
    %90 = vector.load %arg3[%c0_62, %c0_63, %c0_64] : memref<1x14x1xi32, #tpu.memory_space<vmem>>, vector<1x14x1xi32>
    %91 = vector.shape_cast %90 : vector<1x14x1xi32> to vector<14x1xi32>
    %c1_i32 = arith.constant 1 : i32
    %92 = vector.broadcast %c1_i32 : i32 to vector<14x1xi32>
    %93 = arith.subi %91, %92 : vector<14x1xi32>
    %94 = vector.broadcast %arg1 : i32 to vector<14x1xi32>
    %95 = arith.cmpi sgt, %93, %94 : vector<14x1xi32>
    %96 = vector.shape_cast %95 : vector<14x1xi1> to vector<14x1xi1>
    %97 = vector.broadcast %96 : vector<14x1xi1> to vector<14x32xi1>
    %98 = arith.select %97, %89, %3 : vector<14x32xi1>, vector<14x32xf32>
    %c0_65 = arith.constant 0 : index
    %c0_66 = arith.constant 0 : index
    %99 = vector.load %arg12[%c0_65, %c0_66] : memref<16x32xf32, #tpu.memory_space<vmem>>, vector<14x32xf32>
    tpu.vector_store %arg12[%c0_65, %c0_66], %98 {strides = array<i32>} : memref<16x32xf32, #tpu.memory_space<vmem>>, vector<14x32xf32>,
    %100 = vector.shape_cast %95 : vector<14x1xi1> to vector<14x1xi1>
    %101 = vector.broadcast %100 : vector<14x1xi1> to vector<14x32xi1>
    %102 = arith.select %101, %82, %5 : vector<14x32xi1>, vector<14x32xf32>
    %c0_67 = arith.constant 0 : index
    %c0_68 = arith.constant 0 : index
    %103 = vector.load %arg13[%c0_67, %c0_68] : memref<16x32xf32, #tpu.memory_space<vmem>>, vector<14x32xf32>
    tpu.vector_store %arg13[%c0_67, %c0_68], %102 {strides = array<i32>} : memref<16x32xf32, #tpu.memory_space<vmem>>, vector<14x32xf32>,
    %c6_i32 = arith.constant 6 : i32
    %104 = arith.cmpi eq, %arg1, %c6_i32 : i32
    %105 = arith.extui %104 : i1 to i32
    %c0_i32_69 = arith.constant 0 : i32
    %106 = arith.cmpi ne, %105, %c0_i32_69 : i32
    scf.if %106 {
      %c0_70 = arith.constant 0 : index
      %c0_71 = arith.constant 0 : index
      %107 = vector.load %arg12[%c0_70, %c0_71] : memref<16x32xf32, #tpu.memory_space<vmem>>, vector<2x32xf32>
      %c0_72 = arith.constant 0 : index
      %c0_73 = arith.constant 0 : index
      %108 = vector.load %arg11[%c0_72, %c0_73] : memref<2x32xf32, #tpu.memory_space<vmem>>, vector<2x32xf32>
      tpu.vector_store %arg11[%c0_72, %c0_73], %107 {strides = array<i32>} : memref<2x32xf32, #tpu.memory_space<vmem>>, vector<2x32xf32>,
    } else {
    }
    return
  }
  func.func @transform_0(%arg0: i32, %arg1: i32) -> (i32, i32, i32) {
    %c0_i32 = arith.constant 0 : i32
    %c0_i32_0 = arith.constant 0 : i32
    %c0_i32_1 = arith.constant 0 : i32
    return %arg0, %c0_i32, %c0_i32_0 : i32, i32, i32
  }
  func.func @transform_1(%arg0: i32, %arg1: i32) -> (i32, i32, i32) {
    %c0_i32 = arith.constant 0 : i32
    %c0_i32_0 = arith.constant 0 : i32
    %c0_i32_1 = arith.constant 0 : i32
    return %arg0, %c0_i32, %c0_i32_0 : i32, i32, i32
  }
  func.func @transform_2(%arg0: i32, %arg1: i32) -> (i32, i32) {
    %c0_i32 = arith.constant 0 : i32
    %c0_i32_0 = arith.constant 0 : i32
    %c0_i32_1 = arith.constant 0 : i32
    return %c0_i32, %c0_i32_0 : i32, i32
  }
  func.func @transform_3(%arg0: i32, %arg1: i32) -> (i32, i32) {
    %c0_i32 = arith.constant 0 : i32
    %c0_i32_0 = arith.constant 0 : i32
    %c0_i32_1 = arith.constant 0 : i32
    return %c0_i32, %c0_i32_0 : i32, i32
  }
  func.func @transform_4(%arg0: i32, %arg1: i32) -> (i32, i32) {
    %c0_i32 = arith.constant 0 : i32
    %c0_i32_0 = arith.constant 0 : i32
    %c0_i32_1 = arith.constant 0 : i32
    return %c0_i32, %c0_i32_0 : i32, i32
  }
  func.func @transform_5(%arg0: i32, %arg1: i32) -> (i32, i32) {
    %c0_i32 = arith.constant 0 : i32
    %c0_i32_0 = arith.constant 0 : i32
    %c0_i32_1 = arith.constant 0 : i32
    return %c0_i32, %c0_i32_0 : i32, i32
  }
  func.func @transform_6(%arg0: i32, %arg1: i32) -> (i32, i32, i32) {
    %c0_i32 = arith.constant 0 : i32
    %c0_i32_0 = arith.constant 0 : i32
    %c0_i32_1 = arith.constant 0 : i32
    %c0_i32_2 = arith.constant 0 : i32
    return %c0_i32, %c0_i32_0, %c0_i32_1 : i32, i32, i32
  }
  func.func @transform_7(%arg0: i32, %arg1: i32) -> (i32, i32, i32) {
    %c0_i32 = arith.constant 0 : i32
    %c0_i32_0 = arith.constant 0 : i32
    %c0_i32_1 = arith.constant 0 : i32
    %c0_i32_2 = arith.constant 0 : i32
    return %c0_i32, %c0_i32_0, %c0_i32_1 : i32, i32, i32
  }
  func.func @transform_8(%arg0: i32, %arg1: i32) -> (i32, i32, i32) {
    %c0_i32 = arith.constant 0 : i32
    %c0_i32_0 = arith.constant 0 : i32
    %c0_i32_1 = arith.constant 0 : i32
    %c0_i32_2 = arith.constant 0 : i32
    return %c0_i32, %c0_i32_0, %c0_i32_1 : i32, i32, i32
  }
  func.func @transform_9(%arg0: i32, %arg1: i32) -> (i32, i32) {
    %c0_i32 = arith.constant 0 : i32
    %c0_i32_0 = arith.constant 0 : i32
    return %arg0, %c0_i32 : i32, i32
  }
}

</mosaic_0001>

<bundles_post_ra>
// kernel: tpu_custom_call.1
= control target key start
LH: loop header
LB: loop body
LE: loop exit
PB: predicated region body
PF: predicated region fallthrough
CT: control target
= control target key end

     0   :  { %s2678_s0 = inlined_call_operand.vmem [shape: f32[1,16,16], index: 0, kind: input, shape index: {}]   ;;  %s2679_s1 = inlined_call_operand.vmem [shape: s32[1,14,1], index: 1, kind: input, shape index: {}]   ;;  %s2680_s2 = inlined_call_operand.hbm [shape: f32[16,32], index: 2, kind: input, shape index: {}]   ;;  %s2681_s3 = inlined_call_operand.hbm [shape: f32[1,32], index: 3, kind: input, shape index: {}]   ;;  %s2682_s4 = inlined_call_operand.vmem [shape: f32[16,32], index: 4, kind: input, shape index: {}]   ;;  %s2683_s5 = inlined_call_operand.vmem [shape: f32[1,32], index: 5, kind: input, shape index: {}]   ;;  %s2684_s6 = inlined_call_operand.hbm [shape: f32[5,32,32], index: 6, kind: input, shape index: {}]   ;;  %s2685_s7 = inlined_call_operand.hbm [shape: f32[5,32,32], index: 7, kind: input, shape index: {}]   ;;  %s2686_s8 = inlined_call_operand.vmem [shape: f32[5,1,32], index: 8, kind: input, shape index: {}]   ;;  %s2687_s9 = inlined_call_operand.hbm [shape: f32[2,32], index: 9, kind: output, shape index: {}]  }
   0x1   :  { %2693 = sst [smem:[#allocation19_spill]] %s2681_s3 }
   0x2   :  { %14 = vsyncpa [#allocation5], 0 }
   0x3   :  { %15 = vsyncpa [#allocation8], 0 }
   0x4   :  { %16 = vsyncpa [#allocation11], 0 }
   0x5   :  { %17 = vsyncpa [#allocation6], 0  ;;  %s2388_s30 = smov 0   ;;  %s2390_s10 = smov 0  }
   0x6   :  { %s2392_s11 = smov 0  }
   0x7 LB: > { %2694 = sst [smem:[#allocation17_spill]] %s2324_s10  ;;  %s2330_s12 = smov [#allocation7]   ;;  %s2328_s11 = sphi %s2392_s11, %s23_s11   ;;  %s2324_s10 = sphi %s2390_s10, %s2708_s10   ;;  %s2320_s30 = sphi %s2388_s30, %s2707_s30  }
   0x8   : > { %s307_s13 = sshll.u32 %s2330_s12, 4  ;;  %s2691_s14 = sadd.s32 4294967295, %s2328_s11   ;;  %s308_s13 = int_to_ptr.vmem [resolvable:$true] %s307_s13 }
   0x9   : > { %p1683_p0 = scmp.ge.s32.totalorder %s2328_s11, 1  ;;  %p265_p1 = scmp.lt.s32.totalorder %s2328_s11, 8 }
   0xa   : > { %p2408_p2 = scmp.eq.s32.totalorder %s2691_s14, 0  ;;  %s32_s17 = sadd.s32 1, %s2324_s10 }
   0xb   : > { %p2412_p3 = pnand %p1683_p0, %p265_p1  ;;  %p2425_p6 = scmp.ge.s32.totalorder %s32_s17, 7 }
   0xc   : > { %s2695_s15 = scalar_select %p2408_p2, 1, 0 }
   0xd   : > { %s2696_s16 = scalar_select %p2412_p3, 1, 0 }
   0xe   : > { %p2056_p4 = pneg %p2412_p3  ;;  %s2331_s20 = smov [#allocation4]  }
   0xf   : > { %s2698_s19 = scalar_select %p2425_p6, 1, 0 }
  0x10   : > { %p2421_p5 = pnand %p2408_p2, %p2056_p4  ;;  %s293_s21 = sshll.u32 %s2331_s20, 4  ;;  %s2429_s21 = int_to_ptr.vmem [resolvable:$true] %s293_s21 }
  0x11   : > { %s2699_s3 = sld [smem:[#allocation19_spill]] }
  0x12   : > { %p2439_p8 = pneg %p2421_p5 }
  0x17   : > { %s2152_s24 = scalar_lea.hbm %s2699_s3, 16 }
  0x18   : > { %p2153_p7 = scmp.ne.s32.totalorder %s2699_s3, %s2152_s24  ;;  %p2159_p11 = scmp.lt.u32.totalorder %s2152_s24, %s2699_s3 }
  0x1a   : > { %p2155_p9 = pnand %p2439_p8, %p2153_p7 }
  0x1c   : > { %p2156_p10 = pneg %p2155_p9 }
  0x1e   : > { %p2161_p12 = pnand %p2159_p11, %p2156_p10 }
  0x20   : > { %2164 = shalt.err (!%p2161_p12)
}
  0x21   : > { %s2165_s12 = scalar_lea.vmem %s308_s13, 16  ;;  %s2172_s20 = scalar_lea.vmem %s308_s13, 32 }
  0x22   : > { %p2166_p13 = scmp.ne.s32.totalorder %s308_s13, %s2165_s12  ;;  %p2173_p4 = scmp.lt.s32.totalorder %s308_s13, %s308_s13 }
  0x23   : > { %p2174_p2 = scmp.lt.s32.totalorder %s2172_s20, %s2165_s12 }
  0x24   : > { %p2168_p0 = pnand %p2166_p13, %p2439_p8 }
  0x25   : > { %p2175_p3 = por %p2174_p2, %p2173_p4 }
  0x26   : > { %p2169_p1 = pneg %p2168_p0 }
  0x28   : > { %p2176_p6 = pnand %p2175_p3, %p2169_p1 }
  0x2a   : > { %2179 = shalt.err (!%p2176_p6)
}
  0x2b   : > { %2062 = dma.hbm_to_vmem [thread:$0]  (!%p2421_p5), %s2699_s3, 16, %s308_s13, [#allocation8]  }
  0x2c   : > { %p2701_p7 = scmp.ne.s32.totalorder %s2698_s19, 0  ;;  %s2180_s26 = scalar_lea.hbm %s2680_s2, 256 }
  0x2d   : > { %p2181_p2 = scmp.ne.s32.totalorder %s2680_s2, %s2180_s26  ;;  %p2187_p9 = scmp.lt.u32.totalorder %s2180_s26, %s2680_s2 }
  0x2e   : > { %s2710_s17 = smov (%p2701_p7, %s32_s17), 0 }
  0x2f   : > { %2702 = sst [smem:[#allocation18_spill]] %s2710_s17  ;;  %p2183_p3 = pnand %p2181_p2, %p2439_p8 }
  0x31   : > { %p2184_p6 = pneg %p2183_p3 }
  0x33   : > { %p2189_p10 = pnand %p2187_p9, %p2184_p6 }
  0x35   : > { %2192 = shalt.err (!%p2189_p10)
}
  0x36   : > { %s2193_s13 = scalar_lea.vmem %s2429_s21, 256  ;;  %p2201_p0 = scmp.lt.s32.totalorder %s2429_s21, %s2429_s21 }
  0x37   : > { %p2194_p11 = scmp.ne.s32.totalorder %s2429_s21, %s2193_s13  ;;  %p2202_p1 = scmp.lt.s32.totalorder %s2193_s13, %s2193_s13 }
  0x39   : > { %p2196_p12 = pnand %p2194_p11, %p2439_p8  ;;  %p2203_p4 = por %p2202_p1, %p2201_p0 }
  0x3b   : > { %p2197_p13 = pneg %p2196_p12 }
  0x3d   : > { %p2204_p7 = pnand %p2203_p4, %p2197_p13 }
  0x3f   : > { %2207 = shalt.err (!%p2204_p7)
}
  0x40   : > { %s2332_s19 = smov 128   ;;  %s2333_s22 = smov 8  }
  0x41   : > { %2059 = dma.hbm_to_vmem [thread:$0]  (!%p2421_p5), %s2680_s2, 256, %s2429_s21, [#allocation5], %s2332_s19, %s2332_s19, %s2333_s22  }
  0x42   : > { %s2334_s25 = smov [#allocation9]   ;;  %s2335_s28 = smov [#allocation10]  }
  0x43   : > { %s323_s26 = sshll.u32 %s2334_s25, 4  ;;  %s336_s29 = sshll.u32 %s2335_s28, 4  ;;  %s324_s26 = int_to_ptr.vmem [resolvable:$true] %s323_s26  ;;  %s337_s29 = int_to_ptr.vmem [resolvable:$true] %s336_s29 }
  0x44   : > { %s2208_s13 = scalar_lea.hbm %s2684_s6, 2560 }
  0x45   : > { %p2209_p2 = scmp.ne.s32.totalorder %s2684_s6, %s2208_s13  ;;  %p2215_p9 = scmp.lt.u32.totalorder %s2208_s13, %s2684_s6 }
  0x47   : > { %p2211_p3 = pnand %p2209_p2, %p2439_p8 }
  0x49   : > { %p2212_p6 = pneg %p2211_p3 }
  0x4b   : > { %p2217_p10 = pnand %p2215_p9, %p2212_p6 }
  0x4d   : > { %2220 = shalt.err (!%p2217_p10)
}
  0x4e   : > { %s2221_s21 = scalar_lea.vmem %s324_s26, 2560  ;;  %p2229_p0 = scmp.lt.s32.totalorder %s324_s26, %s324_s26 }
  0x4f   : > { %p2222_p11 = scmp.ne.s32.totalorder %s324_s26, %s2221_s21  ;;  %p2230_p1 = scmp.lt.s32.totalorder %s2221_s21, %s2221_s21 }
  0x51   : > { %p2224_p12 = pnand %p2222_p11, %p2439_p8  ;;  %p2231_p4 = por %p2230_p1, %p2229_p0 }
  0x53   : > { %p2225_p13 = pneg %p2224_p12 }
  0x55   : > { %p2232_p7 = pnand %p2231_p4, %p2225_p13 }
  0x57   : > { %2235 = shalt.err (!%p2232_p7)
}
  0x58   : > { %2065 = dma.hbm_to_vmem [thread:$0]  (!%p2421_p5), %s2684_s6, 2560, %s324_s26, [#allocation8], %s2332_s19, %s2332_s19, %s2333_s22  }
  0x59   : > { %s2236_s23 = scalar_lea.hbm %s2685_s7, 2560 }
  0x5a   : > { %p2237_p2 = scmp.ne.s32.totalorder %s2685_s7, %s2236_s23  ;;  %p2243_p9 = scmp.lt.u32.totalorder %s2236_s23, %s2685_s7 }
  0x5c   : > { %p2239_p3 = pnand %p2237_p2, %p2439_p8 }
  0x5e   : > { %p2240_p6 = pneg %p2239_p3 }
  0x60   : > { %p2245_p10 = pnand %p2243_p9, %p2240_p6 }
  0x62   : > { %2248 = shalt.err (!%p2245_p10)
}
  0x63   : > { %s2249_s20 = scalar_lea.vmem %s337_s29, 2560  ;;  %p2257_p0 = scmp.lt.s32.totalorder %s337_s29, %s337_s29 }
  0x64   : > { %p2250_p11 = scmp.ne.s32.totalorder %s337_s29, %s2249_s20  ;;  %p2258_p1 = scmp.lt.s32.totalorder %s2249_s20, %s2249_s20 }
  0x66   : > { %p2252_p12 = pnand %p2250_p11, %p2439_p8  ;;  %p2259_p4 = por %p2258_p1, %p2257_p0 }
  0x68   : > { %p2253_p13 = pneg %p2252_p12 }
  0x6a   : > { %p2260_p7 = pnand %p2259_p4, %p2253_p13 }
  0x6c   : > { %2263 = shalt.err (!%p2260_p7)
}
  0x6d   : > { %2068 = dma.hbm_to_vmem [thread:$0]  (!%p2421_p5), %s2685_s7, 2560, %s337_s29, [#allocation11], %s2332_s19, %s2332_s19, %s2333_s22  }
  0x6e   : > { %p2703_p2 = scmp.ne.s32.totalorder %s2696_s16, 0 }
  0x6f   : > { %p2704_p8 = scmp.ne.s32.totalorder (!%p2703_p2), %s2695_s15, 0 }
  0x70   : > { %355 = sbr.rel (%p2703_p2) target bundleno = 675 (0x2a3), region = 56 }
  0x77   : > { %2303 = dma.done.wait (%p2704_p8), [#allocation5], 256  }
  0x78   : > { %2305 = vsyncadd (%p2704_p8), [#allocation5], 4294967040 }
  0x79   : > { %2307 = dma.done.wait (%p2704_p8), [#allocation8], 2576  }
  0x7a   : > { %2309 = vsyncadd (%p2704_p8), [#allocation8], 4294964720 }
  0x7b   : > { %2311 = dma.done.wait (%p2704_p8), [#allocation11], 2560  }
  0x7c   : > { %2313 = vsyncadd (%p2704_p8), [#allocation11], 4294964736  ;;  %p1695_p5 = scmp.ne.s32.totalorder %s2320_s30, 0 }
  0x7d   : > { %v419_v0 = vld [vmem:[#allocation4] sm:$0xff] (!%p1695_p5)  ;;  %v420_v1 = vld [vmem:[#allocation4 + $0x8] sm:$0xff] (!%p1695_p5)  ;;  %vm428_vm0 = vcmask (!%p1695_p5), 130048   ;;  %v1696_v8 = vld [vmem:[#allocation7] ss:$0 sm:$0xff] (!%p1695_p5)  ;;  %vm510_vm1 = vcmask (!%p1695_p5), 261120  }
  0x7e   : > { %416 = sbr.rel (%p1695_p5) target bundleno = 349 (0x15d), region = 76  ;;  %v513_v2 = vld [vmem:[%s2682_s4] sm:$0xff] (!%p1695_p5)  ;;  %v1938_v3 = vpack.c.bf16 (!%p1695_p5), %v420_v1, %v419_v0  ;;  %v514_v4 = vld [vmem:[%s2682_s4 + $0x8] sm:$0xff] (!%p1695_p5) }
  0x7f   : > { %v417_v5 = vld [vmem:[%s2678_s0] sm:$0xff] (!%p1695_p5)  ;;  %v1942_v6 = vpack.c.bf16 (!%p1695_p5), %v514_v4, %v513_v2  ;;  %v418_v7 = vld [vmem:[%s2678_s0 + $0x8] sm:$0xff] (!%p1695_p5) }
  0x80   : > { %1818 = vmatprep.mubr.msk.f32.mxu0 (!%p1695_p5), %vm428_vm0, %v417_v5  ;;  %1825 = vmatprep.mubr.msk.f32.mxu1 (!%p1695_p5), %vm428_vm0, %v417_v5  ;;  %v1699_v9 = vld [vmem:[%s2683_s5] ss:$0 sm:$0xff] (!%p1695_p5) }
  0x81   : > { %1939 = vmatprep.subr.bf16.mxu0 (!%p1695_p5), %v1938_v3  ;;  %1943 = vmatprep.subr.bf16.mxu1 (!%p1695_p5), %v1942_v6 }
  0x82   : > { %1941 = vmatpush3.bf16.msra.mxu0 (!%p1695_p5), %v1938_v3  ;;  %1945 = vmatpush3.bf16.msra.mxu1 (!%p1695_p5), %v1942_v6 }
  0x85   : > { %1819 = vmatmul.mubr.msk.f32.vlgmr.msra.gmra.mrb[0].mxu0 %vm428_vm0, %v418_v7  ;;  %1826 = vmatmul.mubr.msk.f32.vlgmr.msra.gmra.mrb[0].mxu1 %vm428_vm0, %v418_v7 }
 0x158   : > { %v1820_v10 = vpop.f32.mrb[0].mxu0  ;;  %v1827_v12 = vpop.f32.mrb[0].mxu1 }
 0x159   : > { %v507_v11 = vadd.f32 %v1820_v10, %v1696_v8  ;;  %v501_v13 = vpop.f32.mrb[1].mxu0  ;;  %v594_v14 = vadd.f32 %v1827_v12, %v1699_v9  ;;  %v588_v16 = vpop.f32.mrb[1].mxu1 }
 0x15a   : > { %v502_v15 = vadd.f32 %v1696_v8, %v501_v13  ;;  %v589_v17 = vadd.f32 %v1699_v9, %v588_v16 }
 0x15b   : > { %512 = vst.msk [vmem:[#allocation2 + $0x8] sm:$0xff] %vm510_vm1, %v507_v11  ;;  %598 = vst.msk [vmem:[#allocation3 + $0x8] sm:$0xff] %vm510_vm1, %v594_v14 }
 0x15c   : > { %511 = vst.msk [vmem:[#allocation2] sm:$0xff] %vm510_vm1, %v502_v15  ;;  %597 = vst.msk [vmem:[#allocation3] sm:$0xff] %vm510_vm1, %v589_v17 }
 0x15d PF: > { %v611_v18 = vld [vmem:[#allocation10] sm:$0xff]  ;;  %v612_v19 = vld [vmem:[#allocation10 + $0x8] sm:$0xff]  ;;  %vm615_vm2 = vcmask 261120   ;;  %v613_v23 = vld [vmem:[#allocation10 + $0x10] sm:$0xff]  ;;  %v2336_v25 = vmov 0   ;;  %v1535_v56 = vstv %s2320_s30  ;;  %vm1551_vm6 = vcmask 259072  }
 0x15e   : > { %v607_v20 = vld [vmem:[#allocation9] sm:$0xff]  ;;  %v1946_v21 = vpack.c.bf16 %v612_v19, %v611_v18  ;;  %v608_v22 = vld [vmem:[#allocation9 + $0x8] sm:$0xff]  ;;  %v614_v24 = vld [vmem:[#allocation10 + $0x18] sm:$0xff]  ;;  %2111 = vset.pattern.permute.xlu0 %v2336_v25  ;;  %p1741_p3 = scmp.ne.s32.totalorder %s2320_s30, 6 }
 0x15f   : > { %v1954_v26 = vpack.c.bf16 %v608_v22, %v607_v20  ;;  %v1950_v27 = vpack.c.bf16 %v614_v24, %v613_v23  ;;  %v609_v28 = vld [vmem:[#allocation9 + $0x10] sm:$0xff]  ;;  %v610_v29 = vld [vmem:[#allocation9 + $0x18] sm:$0xff]  ;;  %v793_v33 = vld [vmem:[#allocation10 + $0x20] sm:$0xff]  ;;  %vm1562_vm8 = vcmask (!%p1741_p3), 254976  }
 0x160   : > { %1947 = vmatprep.subr.bf16.mxu1 %v1946_v21  ;;  %v1958_v31 = vpack.c.bf16 %v610_v29, %v609_v28  ;;  %v794_v34 = vld [vmem:[#allocation10 + $0x28] sm:$0xff]  ;;  %v963_v35 = vld [vmem:[#allocation10 + $0x40] sm:$0xff]  ;;  %v795_v39 = vld [vmem:[#allocation10 + $0x30] sm:$0xff] }
 0x161   : > { %1955 = vmatprep.subr.bf16.mxu0 %v1954_v26  ;;  %1949 = vmatpush3.bf16.msra.mxu1 %v1946_v21  ;;  %v1962_v36 = vpack.c.bf16 %v794_v34, %v793_v33  ;;  %v964_v37 = vld [vmem:[#allocation10 + $0x48] sm:$0xff]  ;;  %v796_v40 = vld [vmem:[#allocation10 + $0x38] sm:$0xff]  ;;  %v965_v41 = vld [vmem:[#allocation10 + $0x50] sm:$0xff] }
 0x162   : > { %1957 = vmatpush3.bf16.msra.mxu0 %v1954_v26  ;;  %1951 = vmatprep.subr.bf16.mxu1 %v1950_v27  ;;  %v1978_v38 = vpack.c.bf16 %v964_v37, %v963_v35  ;;  %v966_v42 = vld [vmem:[#allocation10 + $0x58] sm:$0xff]  ;;  %v1966_v45 = vpack.c.bf16 %v796_v40, %v795_v39  ;;  %v788_v47 = vld [vmem:[#allocation9 + $0x20] sm:$0xff]  ;;  %v789_v48 = vld [vmem:[#allocation9 + $0x28] sm:$0xff] }
 0x163   : > { %v2558_v30 = vld [vmem:[#allocation2 + $0x2] sm:$0xff]  ;;  %1959 = vmatprep.subr.bf16.mxu0 %v1958_v31  ;;  %v2566_v43 = vld [vmem:[#allocation2 + $0xa] sm:$0x3f]  ;;  %v1982_v46 = vpack.c.bf16 %v966_v42, %v965_v41  ;;  %v958_v49 = vld [vmem:[#allocation9 + $0x40] sm:$0xff]  ;;  %v1970_v51 = vpack.c.bf16 %v789_v48, %v788_v47 }
 0x164   : > { %1836 = vmatprep.mubr.msk.f32.mxu1 %vm615_vm2, %v2558_v30  ;;  %v2562_v32 = vld [vmem:[#allocation2] sm:$0xff]  ;;  %v2568_v44 = vld [vmem:[#allocation2 + $0x8] sm:$0x3f]  ;;  %v1133_v0 = vld [vmem:[#allocation10 + $0x60] sm:$0xff] }
 0x165   : > { %1847 = vmatprep.mubr.msk.f32.mxu0 %vm615_vm2, %v2562_v32  ;;  %1953 = vmatpush3.bf16.msra.mxu1 %v1950_v27  ;;  %v959_v50 = vld [vmem:[#allocation9 + $0x48] sm:$0xff]  ;;  %v790_v53 = vld [vmem:[#allocation9 + $0x30] sm:$0xff]  ;;  %v791_v54 = vld [vmem:[#allocation9 + $0x38] sm:$0xff] }
 0x166   : > { %1961 = vmatpush3.bf16.msra.mxu0 %v1958_v31  ;;  %1963 = vmatprep.subr.bf16.mxu1 %v1962_v36  ;;  %v1986_v52 = vpack.c.bf16 %v959_v50, %v958_v49  ;;  %v1531_v55 = vld [vmem:[%s2679_s1] sm:$0xff]  ;;  %v961_v58 = vld [vmem:[#allocation9 + $0x58] sm:$0xff]  ;;  %v1974_v62 = vpack.c.bf16 %v791_v54, %v790_v53  ;;  %v1303_v3 = vld [vmem:[#allocation10 + $0x80] sm:$0xff] }
 0x167   : > { %1979 = vmatprep.subr.bf16.mxu0 %v1978_v38  ;;  %v960_v57 = vld [vmem:[#allocation9 + $0x50] sm:$0xff]  ;;  %v1739_v59 = vadd.s32 4294967295, %v1531_v55  ;;  %v1134_v1 = vld [vmem:[#allocation10 + $0x68] sm:$0xff]  ;;  %v1136_v9 = vld [vmem:[#allocation10 + $0x78] sm:$0xff] }
 0x168   : > { %1837 = vmatmul.mubr.msk.f32.vlgmr.msra.gmra.mrb[0].mxu1 %vm615_vm2, %v2566_v43  ;;  %v1532_v60 = vld [vmem:[%s2679_s1 + $0x8] sm:$0x3f]  ;;  %v1990_v63 = vpack.c.bf16 %v961_v58, %v960_v57  ;;  %v1304_v4 = vld [vmem:[#allocation10 + $0x88] sm:$0xff]  ;;  %v1994_v6 = vpack.c.bf16 %v1134_v1, %v1133_v0  ;;  %v1128_v14 = vld [vmem:[#allocation9 + $0x60] sm:$0xff] }
 0x169   : > { %1848 = vmatmul.mubr.msk.f32.vlgmr.msra.gmra.mrb[0].mxu0 %vm615_vm2, %v2568_v44  ;;  %1965 = vmatpush3.bf16.msra.mxu1 %v1962_v36  ;;  %v1740_v61 = vadd.s32 4294967295, %v1532_v60  ;;  %vm1536_vm3 = vcmp.gt.s32.totalorder %v1739_v59, %v1535_v56  ;;  %v2010_v7 = vpack.c.bf16 %v1304_v4, %v1303_v3  ;;  %v1135_v8 = vld [vmem:[#allocation10 + $0x70] sm:$0xff]  ;;  %v1306_v11 = vld [vmem:[#allocation10 + $0x98] sm:$0xff]  ;;  %v1129_v15 = vld [vmem:[#allocation9 + $0x68] sm:$0xff] }
 0x16a   : > { %1981 = vmatpush3.bf16.msra.mxu0 %v1978_v38  ;;  %1967 = vmatprep.subr.bf16.mxu1 %v1966_v45  ;;  %v1538_v2 = vsel %vm1536_vm3, 1, %v2336_v25  ;;  %v1305_v10 = vld [vmem:[#allocation10 + $0x90] sm:$0xff]  ;;  %v1998_v12 = vpack.c.bf16 %v1136_v9, %v1135_v8  ;;  %v1298_v16 = vld [vmem:[#allocation9 + $0x80] sm:$0xff]  ;;  %v1299_v17 = vld [vmem:[#allocation9 + $0x88] sm:$0xff]  ;;  %v2002_v18 = vpack.c.bf16 %v1129_v15, %v1128_v14 }
 0x16b   : > { %1983 = vmatprep.subr.bf16.mxu0 %v1982_v46  ;;  %1858 = vmatprep.mubr.msk.f32.mxu1 %vm615_vm2, %v2558_v30  ;;  %vm1537_vm4 = vcmp.gt.s32.totalorder %v1740_v61, %v1535_v56  ;;  %v2014_v13 = vpack.c.bf16 %v1306_v11, %v1305_v10  ;;  %v2018_v19 = vpack.c.bf16 %v1299_v17, %v1298_v16  ;;  %v1130_v20 = vld [vmem:[#allocation9 + $0x70] sm:$0xff]  ;;  %v1131_v21 = vld [vmem:[#allocation9 + $0x78] sm:$0xff]  ;;  %v1706_v33 = vld [vmem:[%s2686_s8] ss:$0 sm:$0xff] }
 0x16c   : > { %1880 = vmatprep.mubr.msk.f32.mxu0 %vm615_vm2, %v2558_v30  ;;  %1541 = vperm.xlu0 %2111, %v1538_v2   ;;  %v1539_v5 = vsel %vm1537_vm4, 1, %v2336_v25  ;;  %v1300_v22 = vld [vmem:[#allocation9 + $0x90] sm:$0xff]  ;;  %v1301_v23 = vld [vmem:[#allocation9 + $0x98] sm:$0xff]  ;;  %v2006_v24 = vpack.c.bf16 %v1131_v21, %v1130_v20  ;;  %v1712_v38 = vld [vmem:[%s2686_s8 + $0x1] ss:$0 sm:$0xff] }
 0x16d   : > { %1969 = vmatpush3.bf16.msra.mxu1 %v1966_v45  ;;  %v2022_v25 = vpack.c.bf16 %v1301_v23, %v1300_v22  ;;  %v1718_v39 = vld [vmem:[%s2686_s8 + $0x2] ss:$0 sm:$0xff]  ;;  %v1724_v57 = vld [vmem:[%s2686_s8 + $0x3] ss:$0 sm:$0xff]  ;;  %v1730_v58 = vld [vmem:[%s2686_s8 + $0x4] ss:$0 sm:$0xff] }
 0x16e   : > { %1985 = vmatpush3.bf16.msra.mxu0 %v1982_v46  ;;  %1971 = vmatprep.subr.bf16.mxu1 %v1970_v51  ;;  %v604_v16 = vld [vmem:[#allocation3 + $0x8] sm:$0x3f]  ;;  %v603_v20 = vld [vmem:[#allocation3] sm:$0xff] }
 0x16f   : > { %1987 = vmatprep.subr.bf16.mxu0 %v1986_v52  ;;  %v605_v23 = vld [vmem:[#allocation3 + $0x2] sm:$0xff] }
 0x170   : > { %1859 = vmatmul.mubr.msk.f32.vlgmr.msra.gmra.mrb[2].mxu1 %vm615_vm2, %v2566_v43  ;;  %1544 = vperm.xlu0 %2111, %v1539_v5  }
 0x171   : > { %1881 = vmatmul.mubr.msk.f32.vlgmr.msra.gmra.mrb[2].mxu0 %vm615_vm2, %v2566_v43  ;;  %1973 = vmatpush3.bf16.msra.mxu1 %v1970_v51 }
 0x172   : > { %1989 = vmatpush3.bf16.msra.mxu0 %v1986_v52  ;;  %1975 = vmatprep.subr.bf16.mxu1 %v1974_v62 }
 0x173   : > { %1991 = vmatprep.subr.bf16.mxu0 %v1990_v63  ;;  %1869 = vmatprep.mubr.msk.f32.mxu1 %vm615_vm2, %v2562_v32 }
 0x174   : > { %1891 = vmatprep.mubr.msk.f32.mxu0 %vm615_vm2, %v2562_v32 }
 0x175   : > { %1977 = vmatpush3.bf16.msra.mxu1 %v1974_v62 }
 0x176   : > { %1993 = vmatpush3.bf16.msra.mxu0 %v1990_v63  ;;  %1995 = vmatprep.subr.bf16.mxu1 %v1994_v6 }
 0x177   : > { %2011 = vmatprep.subr.bf16.mxu0 %v2010_v7 }
 0x178   : > { %1870 = vmatmul.mubr.msk.f32.vlgmr.msra.gmra.mrb[2].mxu1 %vm615_vm2, %v2568_v44 }
 0x179   : > { %1892 = vmatmul.mubr.msk.f32.vlgmr.msra.gmra.mrb[2].mxu0 %vm615_vm2, %v2568_v44  ;;  %1997 = vmatpush3.bf16.msra.mxu1 %v1994_v6 }
 0x17a   : > { %2013 = vmatpush3.bf16.msra.mxu0 %v2010_v7  ;;  %1999 = vmatprep.subr.bf16.mxu1 %v1998_v12 }
 0x17b   : > { %2015 = vmatprep.subr.bf16.mxu0 %v2014_v13  ;;  %1902 = vmatprep.mubr.msk.f32.mxu1 %vm615_vm2, %v2558_v30 }
 0x17c   : > { %1924 = vmatprep.mubr.msk.f32.mxu0 %vm615_vm2, %v2558_v30 }
 0x17d   : > { %2001 = vmatpush3.bf16.msra.mxu1 %v1998_v12 }
 0x17e   : > { %2017 = vmatpush3.bf16.msra.mxu0 %v2014_v13  ;;  %2003 = vmatprep.subr.bf16.mxu1 %v2002_v18 }
 0x17f   : > { %2019 = vmatprep.subr.bf16.mxu0 %v2018_v19 }
 0x180   : > { %1903 = vmatmul.mubr.msk.f32.vlgmr.msra.gmra.mrb[4].mxu1 %vm615_vm2, %v2566_v43 }
 0x181   : > { %1925 = vmatmul.mubr.msk.f32.vlgmr.msra.gmra.mrb[4].mxu0 %vm615_vm2, %v2566_v43  ;;  %2005 = vmatpush3.bf16.msra.mxu1 %v2002_v18  ;;  %v606_v18 = vld [vmem:[#allocation3 + $0xa] sm:$0x3f] }
 0x182   : > { %2021 = vmatpush3.bf16.msra.mxu0 %v2018_v19  ;;  %2007 = vmatprep.subr.bf16.mxu1 %v2006_v24 }
 0x183   : > { %2023 = vmatprep.subr.bf16.mxu0 %v2022_v25  ;;  %1913 = vmatprep.mubr.msk.f32.mxu1 %vm615_vm2, %v2562_v32 }
 0x184   : > { %1935 = vmatprep.mubr.msk.f32.mxu0 %vm615_vm2, %v2562_v32 }
 0x185   : > { %2009 = vmatpush3.bf16.msra.mxu1 %v2006_v24 }
 0x186   : > { %2025 = vmatpush3.bf16.msra.mxu0 %v2022_v25 }
 0x188   : > { %1914 = vmatmul.mubr.msk.f32.vlgmr.msra.gmra.mrb[4].mxu1 %vm615_vm2, %v2568_v44 }
 0x189   : > { %1936 = vmatmul.mubr.msk.f32.vlgmr.msra.gmra.mrb[4].mxu0 %vm615_vm2, %v2568_v44 }
 0x1eb   : > { %v1542_v13 = vpop.permute.xlu0 %1541 }
 0x1ec   : > { %vm1546_vm7 = vcmp.eq.s32.totalorder %v1542_v13, 1 }
 0x23b   : > { %v1838_v26 = vpop.f32.mrb[0].mxu1 }
 0x23c   : > { %v1849_v27 = vpop.f32.mrb[0].mxu0  ;;  %v688_v28 = vpop.f32.mrb[1].mxu1 }
 0x23d   : > { %v775_v29 = vadd.f32 %v1849_v27, %v1838_v26  ;;  %v769_v30 = vpop.f32.mrb[1].mxu0  ;;  %v1545_v26 = vpop.permute.xlu0 %1544 }
 0x23e   : > { %v770_v31 = vadd.f32 %v769_v30, %v688_v28  ;;  %vm1547_vm5 = vcmp.eq.s32.totalorder %v1545_v26, 1 }
 0x23f   : > { %v786_v34 = vadd.f32 %v1706_v33, %v775_v29 }
 0x240   : > { %v785_v35 = vadd.f32 %v1706_v33, %v770_v31 }
 0x241   : > { %v1736_v36 = vmul.f32 -1.442695, %v786_v34 }
 0x242   : > { %v1735_v37 = vmul.f32 -1.442695, %v785_v35 }
 0x243   : > { %2112 = vpow2.f32 %v1736_v36 }
 0x244   : > { %2114 = vpow2.f32 %v1735_v37 }
 0x24b   : > { %v1871_v40 = vpop.f32.mrb[2].mxu1 }
 0x24c   : > { %v956_v41 = vadd.f32 %v1871_v40, %v1712_v38  ;;  %v1893_v42 = vpop.f32.mrb[2].mxu0  ;;  %v938_v43 = vpop.f32.mrb[3].mxu1 }
 0x24d   : > { %v1126_v45 = vadd.f32 %v1893_v42, %v1718_v39  ;;  %v955_v46 = vadd.f32 %v1712_v38, %v938_v43  ;;  %v1108_v47 = vpop.f32.mrb[3].mxu0  ;;  %v2113_v53 = vpop.eup %2112 }
 0x24e   : > { %v1732_v48 = vmul.f32 -1.442695, %v956_v41  ;;  %v1125_v49 = vadd.f32 %v1718_v39, %v1108_v47  ;;  %v2115_v54 = vpop.eup %2114  ;;  %v1506_v55 = vadd.f32 1.0, %v2113_v53 }
 0x24f   : > { %v1734_v50 = vmul.f32 -1.442695, %v1126_v45  ;;  %v1731_v51 = vmul.f32 -1.442695, %v955_v46  ;;  %v1505_v56 = vadd.f32 1.0, %v2115_v54 }
 0x250   : > { %v1733_v52 = vmul.f32 -1.442695, %v1125_v49  ;;  %2116 = vpow2.f32 %v1732_v48 }
 0x251   : > { %2118 = vpow2.f32 %v1734_v50 }
 0x252   : > { %2120 = vpow2.f32 %v1731_v51 }
 0x253   : > { %2122 = vpow2.f32 %v1733_v52 }
 0x254   : > { %2124 = vrcp.f32 %v1506_v55 }
 0x255   : > { %2126 = vrcp.f32 %v1505_v56 }
 0x25a   : > { %v2117_v60 = vpop.eup %2116 }
 0x25b   : > { %v1915_v59 = vpop.f32.mrb[4].mxu1  ;;  %v2119_v0 = vpop.eup %2118  ;;  %v1474_v1 = vadd.f32 1.0, %v2117_v60 }
 0x25c   : > { %v1296_v61 = vadd.f32 %v1915_v59, %v1724_v57  ;;  %v1937_v62 = vpop.f32.mrb[4].mxu0  ;;  %v1278_v63 = vpop.f32.mrb[5].mxu1  ;;  %v1488_v5 = vadd.f32 1.0, %v2119_v0 }
 0x25d   : > { %v1466_v2 = vadd.f32 %v1937_v62, %v1730_v58  ;;  %v1448_v3 = vpop.f32.mrb[5].mxu0  ;;  %v2121_v4 = vpop.eup %2120  ;;  %v1295_v11 = vadd.f32 %v1724_v57, %v1278_v63 }
 0x25e   : > { %2128 = vtanh.f32 %v1296_v61  ;;  %v1465_v6 = vadd.f32 %v1730_v58, %v1448_v3  ;;  %v2123_v7 = vpop.eup %2122  ;;  %v1473_v8 = vadd.f32 1.0, %v2121_v4 }
 0x25f   : > { %2130 = vrcp.f32 %v1474_v1  ;;  %v1738_v9 = vmul.f32 -1.442695, %v1466_v2  ;;  %v1487_v10 = vadd.f32 1.0, %v2123_v7  ;;  %v2125_v14 = vpop.eup %2124 }
 0x260   : > { %2132 = vrcp.f32 %v1488_v5  ;;  %v1737_v12 = vmul.f32 -1.442695, %v1465_v6  ;;  %v2127_v15 = vpop.eup %2126 }
 0x261   : > { %2134 = vrcp.f32 %v1473_v8 }
 0x262   : > { %2136 = vrcp.f32 %v1487_v10 }
 0x263   : > { %2138 = vpow2.f32 %v1738_v9 }
 0x264   : > { %2140 = vtanh.f32 %v1295_v11 }
 0x265   : > { %2142 = vpow2.f32 %v1737_v12 }
 0x268   : > { %v2129_v17 = vpop.eup %2128 }
 0x269   : > { %v2131_v19 = vpop.eup %2130  ;;  %v1512_v21 = vmul.f32 %v2129_v17, %v2125_v14 }
 0x26a   : > { %v2133_v22 = vpop.eup %2132  ;;  %v1480_v24 = vmul.f32 %v2131_v19, %v604_v16 }
 0x26b   : > { %v2135_v25 = vpop.eup %2134  ;;  %v1494_v27 = vmul.f32 %v2133_v22, %v606_v18 }
 0x26c   : > { %v2137_v28 = vpop.eup %2136  ;;  %v1479_v29 = vmul.f32 %v2135_v25, %v603_v20 }
 0x26d   : > { %v2139_v30 = vpop.eup %2138  ;;  %v1493_v31 = vmul.f32 %v2137_v28, %v605_v23  ;;  %v1496_v33 = vadd.f32 %v1494_v27, %v1480_v24 }
 0x26e   : > { %v2141_v34 = vpop.eup %2140  ;;  %v1522_v35 = vadd.f32 1.0, %v2139_v30 }
 0x26f   : > { %v2143_v36 = vpop.eup %2142  ;;  %v1495_v37 = vadd.f32 %v1493_v31, %v1479_v29  ;;  %v1511_v38 = vmul.f32 %v2141_v34, %v2127_v15  ;;  %v1514_v39 = vadd.f32 %v1512_v21, %v1496_v33 }
 0x270   : > { %2144 = vrcp.f32 %v1522_v35  ;;  %v1521_v40 = vadd.f32 1.0, %v2143_v36 }
 0x271   : > { %v1513_v41 = vadd.f32 %v1511_v38, %v1495_v37  ;;  %2146 = vtanh.f32 %v1514_v39  ;;  %v1554_v42 = vsel %vm1547_vm5, %v1514_v39, %v604_v16 }
 0x272   : > { %2148 = vrcp.f32 %v1521_v40  ;;  %1556 = vst.msk [vmem:[#allocation3 + $0x8] sm:$0x3f] %vm1551_vm6, %v1554_v42 }
 0x273   : > { %2150 = vtanh.f32 %v1513_v41  ;;  %v1553_v43 = vsel %vm1546_vm7, %v1513_v41, %v603_v20 }
 0x274   : > { %1555 = vst.msk [vmem:[#allocation3] sm:$0xff] %vm615_vm2, %v1553_v43 }
 0x27a   : > { %v2145_v45 = vpop.eup %2144 }
 0x27b   : > { %v2147_v46 = vpop.eup %2146  ;;  %1560 = sbr.rel (%p1741_p3) target bundleno = 650 (0x28a), region = 80 }
 0x27c   : > { %v2149_v47 = vpop.eup %2148  ;;  %v1530_v48 = vmul.f32 %v2147_v46, %v2145_v45 }
 0x27d   : > { %v2151_v49 = vpop.eup %2150 }
 0x27e   : > { %v1529_v50 = vmul.f32 %v2151_v49, %v2149_v47  ;;  %v1549_v51 = vsel %vm1547_vm5, %v1530_v48, %v2568_v44 }
 0x27f   : > { %1552 = vst.msk [vmem:[#allocation2 + $0x8] sm:$0x3f] %vm1551_vm6, %v1549_v51 }
 0x280   : > { %v1548_v52 = vsel %vm1546_vm7, %v1529_v50, %v2562_v32 }
 0x281   : > { %1550 = vst.msk [vmem:[#allocation2] sm:$0xff] %vm615_vm2, %v1548_v52 }
 0x288   : > { %v1561_v53 = vld [vmem:[#allocation2] sm:$0x3] }
 0x289   : > { %1563 = vst.msk [vmem:[#allocation12] sm:$0x3] %vm1562_vm8, %v1561_v53 }
 0x28a PF: > { %s2705_s22 = sadd.s32 4294967295, %s2328_s11   ;;  %s2337_s15 = smov [#allocation12]  }
 0x28b   : > { %p2643_p6 = scmp.eq.s32.totalorder %s2705_s22, 6  ;;  %s1573_s21 = sshll.u32 %s2337_s15, 4  ;;  %s1574_s21 = int_to_ptr.vmem [resolvable:$true] %s1573_s21 }
 0x28c   : > { %s2264_s3 = scalar_lea.vmem %s1574_s21, 32  ;;  %p2271_p12 = scmp.lt.s32.totalorder %s1574_s21, %s1574_s21 }
 0x28d   : > { %p2265_p9 = scmp.ne.s32.totalorder %s1574_s21, %s2264_s3  ;;  %p2272_p13 = scmp.lt.s32.totalorder %s2264_s3, %s2264_s3 }
 0x28f   : > { %p2266_p10 = pnand %p2265_p9, %p2643_p6  ;;  %p2273_p0 = por %p2272_p13, %p2271_p12 }
 0x291   : > { %p2267_p11 = pneg %p2266_p10 }
 0x293   : > { %p2274_p1 = pnand %p2273_p0, %p2267_p11 }
 0x295   : > { %2277 = shalt.err (!%p2274_p1)
}
 0x296   : > { %s2278_s14 = scalar_lea.hbm %s2687_s9, 32 }
 0x297   : > { %p2279_p4 = scmp.ne.s32.totalorder %s2687_s9, %s2278_s14  ;;  %p2284_p8 = scmp.lt.u32.totalorder %s2278_s14, %s2687_s9 }
 0x299   : > { %p2280_p7 = pnand %p2279_p4, %p2643_p6 }
 0x29b   : > { %p2281_p2 = pneg %p2280_p7 }
 0x29d   : > { %p2286_p5 = pnand %p2284_p8, %p2281_p2 }
 0x29f   : > { %2289 = shalt.err (!%p2286_p5)
}
 0x2a0   : > { %2053 = dma.vmem_to_hbm [thread:$0]  (%p2643_p6), %s1574_s21, 32, %s2687_s9, [#allocation6]  }
 0x2a1   : > { %2315 = dma.done.wait (%p2643_p6), [#allocation6], 32  }
 0x2a2   : > { %2317 = vsyncadd (%p2643_p6), [#allocation6], 4294967264 }
 0x2a3 PF: > { %s23_s11 = sadd.s32 1, %s2328_s11   ;;  %s2707_s30 = sld [smem:[#allocation17_spill]] }
 0x2a4   : > { %p20_p3 = scmp.ge.s32.totalorder %s23_s11, 9   ;;  %s2708_s10 = sld [smem:[#allocation18_spill]] }
 0x2a6   :  { %22 = sbr.rel (!%p20_p3) target bundleno = 7 (0x7), region = 124 }
 0x2ad   :  { %1586 = vsyncpa [#allocation5], 1 }
 0x2ae   :  { %1588 = vsyncpa [#allocation5 + $0x1], 1 }
 0x2af   :  { %1589 = vsyncpa [#allocation8], 1 }
 0x2b0   :  { %1590 = vsyncpa [#allocation11], 1 }
 0x2b1   :  { %1591 = vsyncpa [#allocation6], 1 }
 0x2b2   :  { %1593 = vsyncpa [#allocation6 + $0x1], 1 }

</bundles_post_ra>
